<compile_context>
chip_gen: v6e
topology: v6e:2x2x1
jax: 0.10.0
libtpu: 0.0.40
codegen_flags: <defaults>
</compile_context>

<pallas_src>
import numpy as np
import jax
import jax.numpy as jnp
from jax.experimental import pallas as pl
from jax.experimental.pallas import tpu as pltpu

N_NODES = 7    # lepton, missing_energy, jet1..jet4, high_level
N_PAD = 8      # node dim padded to 8 rows (row 7 is an all-zero pad node)
N_FEAT = 28
HID = 64
CH = 128

# ---------------------------------------------------------------------------
# Packed-parameter layout
# ---------------------------------------------------------------------------
# P1 [40, 448]:
#   rows  0:28  block-structured layer-1 weights:  rows [lo_i:hi_i], cols [64i:64(i+1)] = W1_group_i
#   rows 32:40  per-node layer-1 biases: row i, cols [64i:64(i+1)] = b1_group_i (zeros elsewhere)
# P2 [456, 128]:
#   rows   0:448  block-stacked layer-2 weights: rows [64i:64(i+1)] = W2_group_i
#   rows 448:456  per-node layer-2 biases: row i = b2_group_i
# P3 [472, 256]:
#   rows   0:128  ARMA1 [Wi | Wr]          rows 128:256  ARMA2 [Wi | Wr]
#   rows 256:384  cls_w1 (cols 0:64)       rows 384:448  cls_w2 (cols 0:1)
#   rows 448:456  gcn_norm adjacency A, padded to 8x8 (cols 0:8)
#   rows 456:464  group feature masks [8, 28] (cols 0:28)
#   row 464 arma1_b (cols 0:128)   row 465 arma2_b (cols 0:128)
#   row 466 cls_b1 (cols 0:64)     row 467 cls_b2 (cols 0:1)


# ---------------------------------------------------------------------------
# single fused Pallas kernel
# ---------------------------------------------------------------------------
def gnn_v7_kernel(x_ref, p1_ref, p2_ref, p3_ref, o_ref):
    # --- event-0 node features via two fused block-structured matmuls ------
    x0 = x_ref[0:1, :]                                    # [1, 28]  (Data(x=x[0]) semantics)
    mask = p3_ref[456:464, 0:N_FEAT]                      # [8, 28]
    xn = mask * x0                                        # [8, 28]  row i = group-i raw features

    h = jnp.dot(xn, p1_ref[0:N_FEAT, :], preferred_element_type=jnp.float32)
    h = jnp.maximum(h + p1_ref[32:40, :], 0.0)            # [8, 448] (row i nonzero only in block i)
    nodes = jnp.dot(h, p2_ref[0:448, :], preferred_element_type=jnp.float32)
    nodes = nodes + p2_ref[448:456, :]                    # [8, 128], pad row 7 == 0

    a = p3_ref[448:456, 0:N_PAD]                          # [8, 8] padded gcn_norm adjacency

    def arma(hh, w, b):
        # ARMAConv(num_stacks=1, num_layers=1): ReLU(A @ (h @ Wi) + h @ Wr + b)
        y = jnp.dot(hh, w, preferred_element_type=jnp.float32)        # [8, 256] = [h@Wi | h@Wr]
        prop = jnp.dot(a, y[:, 0:CH], preferred_element_type=jnp.float32)
        return jnp.maximum(prop + y[:, CH:2 * CH] + b, 0.0)

    h1 = arma(nodes, p3_ref[0:CH, :], p3_ref[464:465, 0:CH])
    h2 = arma(h1, p3_ref[CH:2 * CH, :], p3_ref[465:466, 0:CH])

    # global_max_pool over the 7 real nodes (exclude pad row 7)
    pooled = jnp.max(h2[0:N_NODES, :], axis=0, keepdims=True)         # [1, 128]

    # classifier MLP([128, 64, 1], norm=None)
    c = jnp.dot(pooled, p3_ref[256:384, 0:HID], preferred_element_type=jnp.float32)
    c = jnp.maximum(c + p3_ref[466:467, 0:HID], 0.0)
    out = jnp.dot(c, p3_ref[384:448, 0:1], preferred_element_type=jnp.float32)
    o_ref[...] = out + p3_ref[467:468, 0:1]


# ---------------------------------------------------------------------------
# init-time packing (host-side, runs once; edge_index is static like the module's)
# ---------------------------------------------------------------------------
def _gcn_norm_dense(edge_index, num_nodes):
    """PyG gcn_norm (add_self_loops=False), dense:  A[dst, src] = d^-1/2[src] d^-1/2[dst]."""
    src = np.asarray(edge_index[0], np.int64)
    dst = np.asarray(edge_index[1], np.int64)
    deg = np.zeros(num_nodes, np.float32)
    np.add.at(deg, dst, 1.0)
    dinv = np.where(deg > 0, 1.0 / np.sqrt(np.maximum(deg, 1e-12)), 0.0).astype(np.float32)
    a = np.zeros((num_nodes, num_nodes), np.float32)
    np.add.at(a, (dst, src), dinv[src] * dinv[dst])
    return a


def init_packed_params(key, edge_index):
    ks = iter(jax.random.split(key, 32))

    def rnd(shape, scale):
        return np.asarray(scale * jax.random.normal(next(ks), shape, jnp.float32))

    # per-module weights (jet MLP shared across jet1..jet4, as in the reference)
    mlps = {}
    for name, cin in (("lepton", 3), ("missing", 2), ("jet", 4), ("high", 7)):
        mlps[name] = (rnd((cin, HID), 0.1), rnd((HID,), 0.02),
                      rnd((HID, CH), 0.1), rnd((CH,), 0.02))
    arma = [(rnd((CH, CH), 0.1), rnd((CH, CH), 0.1), rnd((CH,), 0.02)) for _ in range(2)]
    c_w1, c_b1 = rnd((CH, HID), 0.1), rnd((HID,), 0.02)
    c_w2, c_b2 = rnd((HID, 1), 0.1), rnd((1,), 0.02)

    group_names = ("lepton", "missing", "jet", "jet", "jet", "jet", "high")
    col_ranges = ((0, 3), (3, 5), (5, 9), (9, 13), (13, 17), (17, 21), (21, 28))

    p1 = np.zeros((40, N_NODES * HID), np.float32)
    p2 = np.zeros((456, CH), np.float32)
    mask = np.zeros((N_PAD, N_FEAT), np.float32)
    for i, (name, (lo, hi)) in enumerate(zip(group_names, col_ranges)):
        w1, b1, w2, b2 = mlps[name]
        p1[lo:hi, i * HID:(i + 1) * HID] = w1
        p1[32 + i, i * HID:(i + 1) * HID] = b1
        p2[i * HID:(i + 1) * HID, :] = w2
        p2[448 + i, :] = b2
        mask[i, lo:hi] = 1.0

    p3 = np.zeros((472, 2 * CH), np.float32)
    (a1_wi, a1_wr, a1_b), (a2_wi, a2_wr, a2_b) = arma
    p3[0:CH, 0:CH] = a1_wi
    p3[0:CH, CH:2 * CH] = a1_wr
    p3[CH:2 * CH, 0:CH] = a2_wi
    p3[CH:2 * CH, CH:2 * CH] = a2_wr
    p3[256:384, 0:HID] = c_w1
    p3[384:448, 0:1] = c_w2
    p3[448:448 + N_NODES, 0:N_NODES] = _gcn_norm_dense(edge_index, N_NODES)
    p3[456:464, 0:N_FEAT] = mask
    p3[464, 0:CH] = a1_b
    p3[465, 0:CH] = a2_b
    p3[466, 0:HID] = c_b1
    p3[467, 0:1] = c_b2
    return jnp.asarray(p1), jnp.asarray(p2), jnp.asarray(p3)


# ---------------------------------------------------------------------------
# forward: one pallas_call (4 input DMAs, 1 output DMA) for the whole model
# ---------------------------------------------------------------------------
def gnn_v7_forward(p1, p2, p3, x):
    return pl.pallas_call(
        gnn_v7_kernel,
        out_shape=jax.ShapeDtypeStruct((1, 1), jnp.float32),
        in_specs=[pl.BlockSpec(memory_space=pltpu.MemorySpace.VMEM)] * 4,
        out_specs=pl.BlockSpec(memory_space=pltpu.MemorySpace.VMEM),
    )(x, p1, p2, p3)


gnn_v7_forward_jit = jax.jit(gnn_v7_forward)


# ---------------------------------------------------------------------------
if __name__ == "__main__":
    key = jax.random.PRNGKey(0)
    k_x, k_p = jax.random.split(key, 2)

    B = 2
    x = jax.random.normal(k_x, (B, N_FEAT), jnp.float32)

    # TODO(synk): erdos_renyi_graph(6, 0.5) is a host-side random graph build with no
    # Pallas equivalent; use a fixed deterministic undirected 6-node edge list instead
    # (node 6 stays isolated, exactly as in the reference module).
    und = [(0, 1), (0, 2), (1, 3), (2, 4), (3, 5), (4, 5), (1, 4), (0, 5)]
    edges = np.array([(i, j) for (a, b) in und for (i, j) in ((a, b), (b, a))],
                     dtype=np.int32).T                                   # [2, 16]

    p1, p2, p3 = init_packed_params(k_p, edges)

    out = jax.block_until_ready(gnn_v7_forward_jit(p1, p2, p3, x))
    assert out.shape == (1, 1), out.shape
    assert bool(jnp.all(jnp.isfinite(out)))
    print("KERNEL_OK")
</pallas_src>

<mosaic_0001>
module attributes {stable_mosaic.version = 11 : i64} {
  func.func @gnn_v7_kernel(%arg0: memref<2x28xf32, #tpu.memory_space<vmem>>, %arg1: memref<40x448xf32, #tpu.memory_space<vmem>>, %arg2: memref<456x128xf32, #tpu.memory_space<vmem>>, %arg3: memref<472x256xf32, #tpu.memory_space<vmem>>, %arg4: memref<1x1xf32, #tpu.memory_space<vmem>>) attributes {dimension_semantics = [], scalar_prefetch = 0 : i64, scratch_operands = 0 : i64, tpu.core_type = #tpu.core_type<tc>} {
    %c0 = arith.constant 0 : index
    %c0_0 = arith.constant 0 : index
    %0 = vector.load %arg0[%c0, %c0_0] : memref<2x28xf32, #tpu.memory_space<vmem>>, vector<1x28xf32>
    %c456 = arith.constant 456 : index
    %c0_1 = arith.constant 0 : index
    %1 = vector.load %arg3[%c456, %c0_1] : memref<472x256xf32, #tpu.memory_space<vmem>>, vector<8x28xf32>
    %2 = vector.broadcast %0 : vector<1x28xf32> to vector<8x28xf32>
    %3 = arith.mulf %1, %2 : vector<8x28xf32>
    %c0_2 = arith.constant 0 : index
    %c0_3 = arith.constant 0 : index
    %4 = vector.load %arg1[%c0_2, %c0_3] : memref<40x448xf32, #tpu.memory_space<vmem>>, vector<28x448xf32>
    %cst = arith.constant dense<0.000000e+00> : vector<8x448xf32>
    %5 = tpu.matmul %3, %4, %cst {dimension_numbers = #tpu.dot_dimension_numbers<[1], [0], [0], [1], [0, 0, 1, 1], [], []>} : vector<8x28xf32>, vector<28x448xf32>, vector<8x448xf32> -> vector<8x448xf32>
    %c32 = arith.constant 32 : index
    %c0_4 = arith.constant 0 : index
    %6 = vector.load %arg1[%c32, %c0_4] : memref<40x448xf32, #tpu.memory_space<vmem>>, vector<8x448xf32>
    %7 = arith.addf %5, %6 : vector<8x448xf32>
    %cst_5 = arith.constant 0.000000e+00 : f32
    %8 = vector.broadcast %cst_5 : f32 to vector<8x448xf32>
    %9 = arith.maximumf %7, %8 : vector<8x448xf32>
    %c0_6 = arith.constant 0 : index
    %c0_7 = arith.constant 0 : index
    %10 = vector.load %arg2[%c0_6, %c0_7] : memref<456x128xf32, #tpu.memory_space<vmem>>, vector<448x128xf32>
    %cst_8 = arith.constant dense<0.000000e+00> : vector<8x128xf32>
    %11 = tpu.matmul %9, %10, %cst_8 {dimension_numbers = #tpu.dot_dimension_numbers<[1], [0], [0], [1], [0, 0, 1, 1], [], []>} : vector<8x448xf32>, vector<448x128xf32>, vector<8x128xf32> -> vector<8x128xf32>
    %c448 = arith.constant 448 : index
    %c0_9 = arith.constant 0 : index
    %12 = vector.load %arg2[%c448, %c0_9] : memref<456x128xf32, #tpu.memory_space<vmem>>, vector<8x128xf32>
    %13 = arith.addf %11, %12 : vector<8x128xf32>
    %c448_10 = arith.constant 448 : index
    %c0_11 = arith.constant 0 : index
    %14 = vector.load %arg3[%c448_10, %c0_11] : memref<472x256xf32, #tpu.memory_space<vmem>>, vector<8x8xf32>
    %c0_12 = arith.constant 0 : index
    %c0_13 = arith.constant 0 : index
    %15 = vector.load %arg3[%c0_12, %c0_13] : memref<472x256xf32, #tpu.memory_space<vmem>>, vector<128x256xf32>
    %c464 = arith.constant 464 : index
    %c0_14 = arith.constant 0 : index
    %16 = vector.load %arg3[%c464, %c0_14] : memref<472x256xf32, #tpu.memory_space<vmem>>, vector<1x128xf32>
    %cst_15 = arith.constant dense<0.000000e+00> : vector<8x256xf32>
    %17 = tpu.matmul %13, %15, %cst_15 {dimension_numbers = #tpu.dot_dimension_numbers<[1], [0], [0], [1], [0, 0, 1, 1], [], []>} : vector<8x128xf32>, vector<128x256xf32>, vector<8x256xf32> -> vector<8x256xf32>
    %18 = vector.extract_strided_slice %17 {offsets = [0, 0], sizes = [8, 128], strides = [1, 1]} : vector<8x256xf32> to vector<8x128xf32>
    %cst_16 = arith.constant dense<0.000000e+00> : vector<8x128xf32>
    %19 = tpu.matmul %14, %18, %cst_16 {dimension_numbers = #tpu.dot_dimension_numbers<[1], [0], [0], [1], [0, 0, 1, 1], [], []>} : vector<8x8xf32>, vector<8x128xf32>, vector<8x128xf32> -> vector<8x128xf32>
    %20 = vector.extract_strided_slice %17 {offsets = [0, 128], sizes = [8, 128], strides = [1, 1]} : vector<8x256xf32> to vector<8x128xf32>
    %21 = arith.addf %19, %20 : vector<8x128xf32>
    %22 = vector.broadcast %16 : vector<1x128xf32> to vector<8x128xf32>
    %23 = arith.addf %21, %22 : vector<8x128xf32>
    %cst_17 = arith.constant 0.000000e+00 : f32
    %24 = vector.broadcast %cst_17 : f32 to vector<8x128xf32>
    %25 = arith.maximumf %23, %24 : vector<8x128xf32>
    %c128 = arith.constant 128 : index
    %c0_18 = arith.constant 0 : index
    %26 = vector.load %arg3[%c128, %c0_18] : memref<472x256xf32, #tpu.memory_space<vmem>>, vector<128x256xf32>
    %c465 = arith.constant 465 : index
    %c0_19 = arith.constant 0 : index
    %27 = vector.load %arg3[%c465, %c0_19] : memref<472x256xf32, #tpu.memory_space<vmem>>, vector<1x128xf32>
    %cst_20 = arith.constant dense<0.000000e+00> : vector<8x256xf32>
    %28 = tpu.matmul %25, %26, %cst_20 {dimension_numbers = #tpu.dot_dimension_numbers<[1], [0], [0], [1], [0, 0, 1, 1], [], []>} : vector<8x128xf32>, vector<128x256xf32>, vector<8x256xf32> -> vector<8x256xf32>
    %29 = vector.extract_strided_slice %28 {offsets = [0, 0], sizes = [8, 128], strides = [1, 1]} : vector<8x256xf32> to vector<8x128xf32>
    %cst_21 = arith.constant dense<0.000000e+00> : vector<8x128xf32>
    %30 = tpu.matmul %14, %29, %cst_21 {dimension_numbers = #tpu.dot_dimension_numbers<[1], [0], [0], [1], [0, 0, 1, 1], [], []>} : vector<8x8xf32>, vector<8x128xf32>, vector<8x128xf32> -> vector<8x128xf32>
    %31 = vector.extract_strided_slice %28 {offsets = [0, 128], sizes = [8, 128], strides = [1, 1]} : vector<8x256xf32> to vector<8x128xf32>
    %32 = arith.addf %30, %31 : vector<8x128xf32>
    %33 = vector.broadcast %27 : vector<1x128xf32> to vector<8x128xf32>
    %34 = arith.addf %32, %33 : vector<8x128xf32>
    %cst_22 = arith.constant 0.000000e+00 : f32
    %35 = vector.broadcast %cst_22 : f32 to vector<8x128xf32>
    %36 = arith.maximumf %34, %35 : vector<8x128xf32>
    %37 = vector.extract_strided_slice %36 {offsets = [0, 0], sizes = [7, 128], strides = [1, 1]} : vector<8x128xf32> to vector<7x128xf32>
    %cst_23 = arith.constant dense<0xFF800000> : vector<128xf32>
    %38 = vector.multi_reduction <maximumf>, %37, %cst_23 [0] : vector<7x128xf32> to vector<128xf32>
    %39 = vector.shape_cast %38 : vector<128xf32> to vector<1x128xf32>
    %c256 = arith.constant 256 : index
    %c0_24 = arith.constant 0 : index
    %40 = vector.load %arg3[%c256, %c0_24] : memref<472x256xf32, #tpu.memory_space<vmem>>, vector<128x64xf32>
    %cst_25 = arith.constant dense<0.000000e+00> : vector<1x64xf32>
    %41 = tpu.matmul %39, %40, %cst_25 {dimension_numbers = #tpu.dot_dimension_numbers<[1], [0], [0], [1], [0, 0, 1, 1], [], []>} : vector<1x128xf32>, vector<128x64xf32>, vector<1x64xf32> -> vector<1x64xf32>
    %c466 = arith.constant 466 : index
    %c0_26 = arith.constant 0 : index
    %42 = vector.load %arg3[%c466, %c0_26] : memref<472x256xf32, #tpu.memory_space<vmem>>, vector<1x64xf32>
    %43 = arith.addf %41, %42 : vector<1x64xf32>
    %cst_27 = arith.constant 0.000000e+00 : f32
    %44 = vector.broadcast %cst_27 : f32 to vector<1x64xf32>
    %45 = arith.maximumf %43, %44 : vector<1x64xf32>
    %c384 = arith.constant 384 : index
    %c0_28 = arith.constant 0 : index
    %46 = vector.load %arg3[%c384, %c0_28] : memref<472x256xf32, #tpu.memory_space<vmem>>, vector<64x1xf32>
    %cst_29 = arith.constant dense<0.000000e+00> : vector<1x1xf32>
    %47 = tpu.matmul %45, %46, %cst_29 {dimension_numbers = #tpu.dot_dimension_numbers<[1], [0], [0], [1], [0, 0, 1, 1], [], []>} : vector<1x64xf32>, vector<64x1xf32>, vector<1x1xf32> -> vector<1x1xf32>
    %c467 = arith.constant 467 : index
    %c0_30 = arith.constant 0 : index
    %48 = vector.load %arg3[%c467, %c0_30] : memref<472x256xf32, #tpu.memory_space<vmem>>, vector<1x1xf32>
    %49 = arith.addf %47, %48 : vector<1x1xf32>
    %c0_31 = arith.constant 0 : index
    %c0_32 = arith.constant 0 : index
    %50 = vector.load %arg4[%c0_31, %c0_32] : memref<1x1xf32, #tpu.memory_space<vmem>>, vector<1x1xf32>
    tpu.vector_store %arg4[%c0_31, %c0_32], %49 {strides = array<i32>} : memref<1x1xf32, #tpu.memory_space<vmem>>, vector<1x1xf32>,
    return
  }
}

</mosaic_0001>

<bundles_post_ra>
// kernel: gnn_v7_forward.1
= control target key start
LH: loop header
LB: loop body
LE: loop exit
PB: predicated region body
PF: predicated region fallthrough
CT: control target
= control target key end

     0   :  { %9 = vsyncpa [#allocation3], 0  ;;  %s1363_s0 = inlined_call_operand.vmem [shape: f32[2,28], index: 0, kind: input, shape index: {}]   ;;  %s1364_s1 = inlined_call_operand.hbm [shape: f32[40,448], index: 1, kind: input, shape index: {}]   ;;  %s1365_s2 = inlined_call_operand.hbm [shape: f32[456,128], index: 2, kind: input, shape index: {}]   ;;  %s1366_s3 = inlined_call_operand.hbm [shape: f32[472,256], index: 3, kind: input, shape index: {}]   ;;  %s1367_s4 = inlined_call_operand.hbm [shape: f32[1,1], index: 4, kind: output, shape index: {}]  }
   0x1   :  { %10 = vsyncpa [#allocation6], 0 }
   0x2   :  { %11 = vsyncpa [#allocation4], 0  ;;  %s1241_s15 = smov [#allocation5]  }
   0x3   :  { %s31_s16 = sshll.u32 %s1241_s15, 4  ;;  %s32_s16 = int_to_ptr.vmem [resolvable:$true] %s31_s16 }
   0x4   :  { %s1163_s17 = scalar_lea.vmem %s32_s16, 7296  ;;  %p1168_p1 = scmp.lt.s32.totalorder %s32_s16, %s32_s16 }
   0x5   :  { %p1164_p0 = scmp.ne.s32.totalorder %s32_s16, %s1163_s17  ;;  %p1169_p2 = scmp.lt.s32.totalorder %s1163_s17, %s1163_s17 }
   0x7   :  { %p1170_p3 = por %p1169_p2, %p1168_p1 }
   0x9   :  { %p1171_p4 = pnand %p1170_p3, %p1164_p0 }
   0xb   :  { %1174 = shalt.err (!%p1171_p4)
}
   0xc   :  { %s1242_s18 = smov 128   ;;  %s1243_s19 = smov 8  }
   0xd   :  { %37 = dma.hbm_to_vmem [thread:$0]  %s1365_s2, 7296, %s32_s16, [#allocation6], %s1242_s18, %s1242_s18, %s1243_s19  }
   0xe   :  { %s1244_s22 = smov [#allocation2]  }
   0xf   :  { %s19_s23 = sshll.u32 %s1244_s22, 4  ;;  %s20_s23 = int_to_ptr.vmem [resolvable:$true] %s19_s23 }
  0x10   :  { %s1183_s24 = scalar_lea.vmem %s20_s23, 2560  ;;  %p1188_p6 = scmp.lt.s32.totalorder %s20_s23, %s20_s23 }
  0x11   :  { %p1184_p5 = scmp.ne.s32.totalorder %s20_s23, %s1183_s24  ;;  %p1189_p7 = scmp.lt.s32.totalorder %s1183_s24, %s1183_s24 }
  0x13   :  { %p1190_p8 = por %p1189_p7, %p1188_p6 }
  0x15   :  { %p1191_p9 = pnand %p1190_p8, %p1184_p5 }
  0x17   :  { %1194 = shalt.err (!%p1191_p9)
}
  0x18   :  { %s1245_s25 = smov 512   ;;  %s1246_s26 = smov 32  }
  0x19   :  { %25 = dma.hbm_to_vmem [thread:$0]  %s1364_s1, 2560, %s20_s23, [#allocation3], %s1245_s25, %s1245_s25, %s1246_s26  }
  0x1a   :  { %s1247_s29 = smov [#allocation7]  }
  0x1b   :  { %s43_s30 = sshll.u32 %s1247_s29, 4  ;;  %s44_s30 = int_to_ptr.vmem [resolvable:$true] %s43_s30 }
  0x1c   :  { %s1203_s2 = scalar_lea.vmem %s44_s30, 15104  ;;  %p1208_p11 = scmp.lt.s32.totalorder %s44_s30, %s44_s30 }
  0x1d   :  { %p1204_p10 = scmp.ne.s32.totalorder %s44_s30, %s1203_s2  ;;  %p1209_p12 = scmp.lt.s32.totalorder %s1203_s2, %s1203_s2 }
  0x1f   :  { %p1210_p13 = por %p1209_p12, %p1208_p11 }
  0x21   :  { %p1211_p0 = pnand %p1210_p13, %p1204_p10 }
  0x23   :  { %1214 = shalt.err (!%p1211_p0)
}
  0x24   :  { %s1248_s5 = smov 256   ;;  %s1249_s6 = smov 16  }
  0x25   :  { %49 = dma.hbm_to_vmem [thread:$0]  %s1366_s3, 15104, %s44_s30, [#allocation6], %s1248_s5, %s1248_s5, %s1249_s6  }
  0x26   :  { %1235 = dma.done.wait [#allocation3], 2560  }
  0x27   :  { %1236 = vsyncadd [#allocation3], 4294964736 }
  0x28   :  { %1237 = dma.done.wait [#allocation6], 22400  }
  0x29   :  { %1238 = vsyncadd [#allocation6], 4294944896  ;;  %v1250_v0 = vmov 0.0   ;;  %vm90_vm0 = vcmask 1043456   ;;  %v79_v1 = vld [vmem:[#allocation2 + $0x68] sm:$0xf] }
  0x2a   :  { %167 = vmatprep.mubr.f32.mxu0 %v1250_v0  ;;  %238 = vmatprep.mubr.f32.mxu1 %v1250_v0  ;;  %v78_v2 = vld [vmem:[#allocation2 + $0x60] sm:$0xf]  ;;  %v81_v3 = vld [vmem:[#allocation2 + $0x78] sm:$0xf]  ;;  %v75_v4 = vld [vmem:[#allocation2 + $0x48] sm:$0xff]  ;;  %vm86_vm1 = vcmask 228352  }
  0x2b   :  { %1004 = vmatprep.subr.msk.mxu0 %vm90_vm0, %v79_v1  ;;  %1007 = vmatprep.subr.msk.mxu1 %vm90_vm0, %v81_v3  ;;  %v80_v5 = vld [vmem:[#allocation2 + $0x70] sm:$0xf]  ;;  %v74_v6 = vld [vmem:[#allocation2 + $0x40] sm:$0xff]  ;;  %v77_v7 = vld [vmem:[#allocation2 + $0x58] sm:$0xff]  ;;  %vm306_vm2 = vcmask 523264   ;;  %vm1251_vm3 = vmmov 0  }
  0x2c   :  { %1005 = vmatpush1.msk.msra.mxu0 %vm90_vm0, %v78_v2  ;;  %1008 = vmatpush1.msk.msra.mxu1 %vm90_vm0, %v80_v5  ;;  %v71_v8 = vld [vmem:[#allocation2 + $0x28] sm:$0xff]  ;;  %v76_v9 = vld [vmem:[#allocation2 + $0x50] sm:$0xff]  ;;  %v70_v10 = vld [vmem:[#allocation2 + $0x20] sm:$0xff]  ;;  %vm555_vm4 = vcmask 64512   ;;  %vm807_vm5 = vcmask 1046528   ;;  %vm985_vm6 = vcmask 0  }
  0x2d   :  { %129 = vmatprep.subr.mxu0 %v75_v4  ;;  %200 = vmatprep.subr.mxu1 %v77_v7  ;;  %v73_v11 = vld [vmem:[#allocation2 + $0x38] sm:$0xff]  ;;  %v67_v12 = vld [vmem:[#allocation2 + $0x8] sm:$0xff]  ;;  %v72_v13 = vld [vmem:[#allocation2 + $0x30] sm:$0xff] }
  0x2e   :  { %130 = vmatpush1.msra.mxu0 %v74_v6  ;;  %201 = vmatpush1.msra.mxu1 %v76_v9  ;;  %v66_v14 = vld [vmem:[#allocation2] sm:$0xff]  ;;  %v69_v15 = vld [vmem:[#allocation2 + $0x18] sm:$0xff]  ;;  %v68_v18 = vld [vmem:[#allocation2 + $0x10] sm:$0xff] }
  0x2f   :  { %131 = vmatprep.subr.mxu0 %v71_v8  ;;  %202 = vmatprep.subr.mxu1 %v73_v11  ;;  %v1003_v16 = vld [vmem:[%s1363_s0] ss:$0 sm:$0xff]  ;;  %v60_v17 = vld [vmem:[#allocation7 + $0x390] sm:$0xff]  ;;  %v279_v23 = vld [vmem:[#allocation5 + $0xf0] sm:$0xff]  ;;  %s1252_s0 = smov [#allocation8]  }
  0x30   :  { %132 = vmatpush1.msra.mxu0 %v70_v10  ;;  %203 = vmatpush1.msra.mxu1 %v72_v13  ;;  %v65_v19 = vmul.f32 %v1003_v16, %v60_v17  ;;  %v296_v20 = vld [vmem:[#allocation5 + $0x178] sm:$0xff]  ;;  %v295_v24 = vld [vmem:[#allocation5 + $0x170] sm:$0xff]  ;;  %v278_v26 = vld [vmem:[#allocation5 + $0xe8] sm:$0xff]  ;;  %s993_s9 = sshll.u32 %s1252_s0, 4  ;;  %s994_s9 = int_to_ptr.vmem [resolvable:$true] %s993_s9 }
  0x31   :  { %133 = vmatprep.subr.mxu0 %v67_v12  ;;  %204 = vmatprep.subr.mxu1 %v69_v15  ;;  %v280_v21 = vld [vmem:[#allocation5 + $0xf8] sm:$0xff]  ;;  %v263_v25 = vld [vmem:[#allocation5 + $0x70] sm:$0xff]  ;;  %v294_v27 = vld [vmem:[#allocation5 + $0x168] sm:$0xff]  ;;  %s1215_s10 = scalar_lea.vmem %s994_s9, 16  ;;  %s1219_s11 = scalar_lea.vmem %s994_s9, 32 }
  0x32   :  { %134 = vmatpush1.msra.mxu0 %v66_v14  ;;  %205 = vmatpush1.msra.mxu1 %v68_v18  ;;  %v264_v22 = vld [vmem:[#allocation5 + $0x78] sm:$0xff]  ;;  %v262_v28 = vld [vmem:[#allocation5 + $0x68] sm:$0xff]  ;;  %v277_v29 = vld [vmem:[#allocation5 + $0xe0] sm:$0xff]  ;;  %p1216_p1 = scmp.ne.s32.totalorder %s994_s9, %s1215_s10  ;;  %p1220_p2 = scmp.lt.s32.totalorder %s994_s9, %s994_s9 }
  0x33   :  { %1006 = vmatmul.mubr.msk.f32.vlgmr.msra.gmra.mxu0 %vm86_vm1, %v65_v19  ;;  %1009 = vmatmul.mubr.msk.f32.vlgmr.msra.gmra.mxu1 %vm86_vm1, %v65_v19  ;;  %v293_v30 = vld [vmem:[#allocation5 + $0x160] sm:$0xff]  ;;  %v276_v32 = vld [vmem:[#allocation5 + $0xd8] sm:$0xff]  ;;  %v275_v35 = vld [vmem:[#allocation5 + $0xd0] sm:$0xff]  ;;  %p1221_p3 = scmp.lt.s32.totalorder %s1219_s11, %s1215_s10 }
  0x34   :  { %380 = vmatprep.subr.mxu1 %v1250_v0  ;;  %1014 = vmatprep.subr.mxu0 %v280_v21  ;;  %v261_v31 = vld [vmem:[#allocation5 + $0x60] sm:$0xff]  ;;  %v292_v33 = vld [vmem:[#allocation5 + $0x158] sm:$0xff]  ;;  %v291_v36 = vld [vmem:[#allocation5 + $0x150] sm:$0xff] }
  0x35   :  { %381 = vmatpush1.msra.mxu1 %v296_v20  ;;  %1015 = vmatpush3.msra.mxu0 %v264_v22  ;;  %v260_v34 = vld [vmem:[#allocation5 + $0x58] sm:$0xff]  ;;  %v259_v37 = vld [vmem:[#allocation5 + $0x50] sm:$0xff]  ;;  %v274_v38 = vld [vmem:[#allocation5 + $0xc8] sm:$0xff]  ;;  %p1222_p4 = por %p1221_p3, %p1220_p2 }
  0x36   :  { %382 = vmatprep.subr.mxu1 %v1250_v0  ;;  %1016 = vmatprep.subr.mxu0 %v279_v23  ;;  %v290_v39 = vld [vmem:[#allocation5 + $0x148] sm:$0xff]  ;;  %v273_v41 = vld [vmem:[#allocation5 + $0xc0] sm:$0xff]  ;;  %v272_v44 = vld [vmem:[#allocation5 + $0xb8] sm:$0xff] }
  0x37   :  { %383 = vmatpush1.msra.mxu1 %v295_v24  ;;  %1017 = vmatpush3.msra.mxu0 %v263_v25  ;;  %v258_v40 = vld [vmem:[#allocation5 + $0x48] sm:$0xff]  ;;  %v289_v42 = vld [vmem:[#allocation5 + $0x140] sm:$0xff]  ;;  %v288_v45 = vld [vmem:[#allocation5 + $0x138] sm:$0xff]  ;;  %p1223_p5 = pnand %p1222_p4, %p1216_p1 }
  0x38   :  { %384 = vmatprep.subr.mxu1 %v1250_v0  ;;  %1018 = vmatprep.subr.mxu0 %v278_v26  ;;  %v257_v43 = vld [vmem:[#allocation5 + $0x40] sm:$0xff]  ;;  %v256_v46 = vld [vmem:[#allocation5 + $0x38] sm:$0xff]  ;;  %v271_v47 = vld [vmem:[#allocation5 + $0xb0] sm:$0xff] }
  0x39   :  { %385 = vmatpush1.msra.mxu1 %v294_v27  ;;  %1019 = vmatpush3.msra.mxu0 %v262_v28  ;;  %v287_v48 = vld [vmem:[#allocation5 + $0x130] sm:$0xff]  ;;  %v270_v50 = vld [vmem:[#allocation5 + $0xa8] sm:$0xff]  ;;  %v269_v53 = vld [vmem:[#allocation5 + $0xa0] sm:$0xff] }
  0x3a   :  { %386 = vmatprep.subr.mxu1 %v1250_v0  ;;  %1020 = vmatprep.subr.mxu0 %v277_v29  ;;  %v255_v49 = vld [vmem:[#allocation5 + $0x30] sm:$0xff]  ;;  %v286_v51 = vld [vmem:[#allocation5 + $0x128] sm:$0xff]  ;;  %v285_v54 = vld [vmem:[#allocation5 + $0x120] sm:$0xff] }
  0x3b   :  { %387 = vmatpush1.msra.mxu1 %v293_v30  ;;  %1021 = vmatpush3.msra.mxu0 %v261_v31  ;;  %v254_v52 = vld [vmem:[#allocation5 + $0x28] sm:$0xff]  ;;  %v253_v55 = vld [vmem:[#allocation5 + $0x20] sm:$0xff]  ;;  %v284_v56 = vld [vmem:[#allocation5 + $0x118] sm:$0xff] }
  0x3c   :  { %388 = vmatprep.subr.mxu1 %v1250_v0  ;;  %1022 = vmatprep.subr.mxu0 %v276_v32  ;;  %v283_v57 = vld [vmem:[#allocation5 + $0x110] sm:$0xff]  ;;  %v282_v58 = vld [vmem:[#allocation5 + $0x108] sm:$0xff]  ;;  %v281_v59 = vld [vmem:[#allocation5 + $0x100] sm:$0xff] }
  0x3d   :  { %389 = vmatpush1.msra.mxu1 %v292_v33  ;;  %1023 = vmatpush3.msra.mxu0 %v260_v34  ;;  %v304_v60 = vld [vmem:[#allocation5 + $0x1b8] sm:$0xff]  ;;  %v303_v61 = vld [vmem:[#allocation5 + $0x1b0] sm:$0xff]  ;;  %v302_v62 = vld [vmem:[#allocation5 + $0x1a8] sm:$0xff] }
  0x3e   :  { %390 = vmatprep.subr.mxu1 %v1250_v0  ;;  %1024 = vmatprep.subr.mxu0 %v275_v35  ;;  %v268_v63 = vld [vmem:[#allocation5 + $0x98] sm:$0xff]  ;;  %v301_v1 = vld [vmem:[#allocation5 + $0x1a0] sm:$0xff]  ;;  %v267_v3 = vld [vmem:[#allocation5 + $0x90] sm:$0xff] }
  0x3f   :  { %391 = vmatpush1.msra.mxu1 %v291_v36  ;;  %1025 = vmatpush3.msra.mxu0 %v259_v37  ;;  %v252_v2 = vld [vmem:[#allocation5 + $0x18] sm:$0xff]  ;;  %v251_v5 = vld [vmem:[#allocation5 + $0x10] sm:$0xff]  ;;  %v266_v6 = vld [vmem:[#allocation5 + $0x88] sm:$0xff] }
  0x40   :  { %392 = vmatprep.subr.mxu1 %v1250_v0  ;;  %1026 = vmatprep.subr.mxu0 %v274_v38  ;;  %v300_v4 = vld [vmem:[#allocation5 + $0x198] sm:$0xff]  ;;  %v299_v7 = vld [vmem:[#allocation5 + $0x190] sm:$0xff]  ;;  %v250_v8 = vld [vmem:[#allocation5 + $0x8] sm:$0xff] }
  0x41   :  { %393 = vmatpush1.msra.mxu1 %v290_v39  ;;  %1027 = vmatpush3.msra.mxu0 %v258_v40  ;;  %v265_v9 = vld [vmem:[#allocation5 + $0x80] sm:$0xff]  ;;  %v298_v10 = vld [vmem:[#allocation5 + $0x188] sm:$0xff]  ;;  %v84_v14 = vld [vmem:[#allocation2 + $0x90] sm:$0xff] }
  0x42   :  { %394 = vmatprep.subr.mxu1 %v1250_v0  ;;  %1028 = vmatprep.subr.mxu0 %v273_v41  ;;  %v249_v11 = vld [vmem:[#allocation5] sm:$0xff]  ;;  %v83_v18 = vld [vmem:[#allocation2 + $0x88] sm:$0xff]  ;;  %v85_v19 = vld [vmem:[#allocation2 + $0x98] sm:$0xff] }
  0x43   :  { %395 = vmatpush1.msra.mxu1 %v289_v42  ;;  %1029 = vmatpush3.msra.mxu0 %v257_v43  ;;  %v297_v12 = vld [vmem:[#allocation5 + $0x180] sm:$0xff]  ;;  %v481_v30 = vld [vmem:[#allocation7 + $0xf0] sm:$0xff]  ;;  %v480_v31 = vld [vmem:[#allocation7 + $0xe8] sm:$0xff] }
  0x44   :  { %396 = vmatprep.subr.mxu1 %v1250_v0  ;;  %1030 = vmatprep.subr.mxu0 %v272_v44  ;;  %v482_v13 = vld [vmem:[#allocation7 + $0xf8] sm:$0xff]  ;;  %v479_v32 = vld [vmem:[#allocation7 + $0xe0] sm:$0xff]  ;;  %v477_v34 = vld [vmem:[#allocation7 + $0xd0] sm:$0xff] }
  0x45   :  { %397 = vmatpush1.msra.mxu1 %v288_v45  ;;  %1031 = vmatpush3.msra.mxu0 %v256_v46  ;;  %v82_v15 = vld [vmem:[#allocation2 + $0x80] sm:$0xff]  ;;  %v476_v35 = vld [vmem:[#allocation7 + $0xc8] sm:$0xff]  ;;  %v475_v36 = vld [vmem:[#allocation7 + $0xc0] sm:$0xff] }
  0x46   :  { %398 = vmatprep.subr.mxu1 %v1250_v0  ;;  %1032 = vmatprep.subr.mxu0 %v271_v47  ;;  %v478_v33 = vld [vmem:[#allocation7 + $0xd8] sm:$0xff]  ;;  %v473_v38 = vld [vmem:[#allocation7 + $0xb0] sm:$0xff]  ;;  %v472_v39 = vld [vmem:[#allocation7 + $0xa8] sm:$0xff] }
  0x47   :  { %399 = vmatpush1.msra.mxu1 %v287_v48  ;;  %1033 = vmatpush3.msra.mxu0 %v255_v49  ;;  %v474_v37 = vld [vmem:[#allocation7 + $0xb8] sm:$0xff]  ;;  %v471_v40 = vld [vmem:[#allocation7 + $0xa0] sm:$0xff]  ;;  %v469_v42 = vld [vmem:[#allocation7 + $0x90] sm:$0xff] }
  0x48   :  { %400 = vmatprep.subr.mxu1 %v1250_v0  ;;  %1034 = vmatprep.subr.mxu0 %v270_v50  ;;  %v470_v41 = vld [vmem:[#allocation7 + $0x98] sm:$0xff]  ;;  %v468_v43 = vld [vmem:[#allocation7 + $0x88] sm:$0xff]  ;;  %v467_v44 = vld [vmem:[#allocation7 + $0x80] sm:$0xff] }
  0x49   :  { %401 = vmatpush1.msra.mxu1 %v286_v51  ;;  %1035 = vmatpush3.msra.mxu0 %v254_v52  ;;  %v466_v45 = vld [vmem:[#allocation7 + $0x78] sm:$0xff]  ;;  %v465_v46 = vld [vmem:[#allocation7 + $0x70] sm:$0xff]  ;;  %v464_v47 = vld [vmem:[#allocation7 + $0x68] sm:$0xff] }
  0x4a   :  { %402 = vmatprep.subr.mxu1 %v1250_v0  ;;  %1036 = vmatprep.subr.mxu0 %v269_v53  ;;  %v463_v48 = vld [vmem:[#allocation7 + $0x60] sm:$0xff]  ;;  %v462_v49 = vld [vmem:[#allocation7 + $0x58] sm:$0xff]  ;;  %v461_v50 = vld [vmem:[#allocation7 + $0x50] sm:$0xff] }
  0x4b   :  { %403 = vmatpush1.msra.mxu1 %v285_v54  ;;  %1037 = vmatpush3.msra.mxu0 %v253_v55  ;;  %v460_v51 = vld [vmem:[#allocation7 + $0x48] sm:$0xff]  ;;  %v459_v52 = vld [vmem:[#allocation7 + $0x40] sm:$0xff]  ;;  %v458_v53 = vld [vmem:[#allocation7 + $0x38] sm:$0xff] }
  0x4c   :  { %404 = vmatprep.subr.mxu1 %v1250_v0  ;;  %1038 = vmatprep.subr.mxu0 %v268_v63  ;;  %v457_v54 = vld [vmem:[#allocation7 + $0x30] sm:$0xff]  ;;  %v456_v55 = vld [vmem:[#allocation7 + $0x28] sm:$0xff]  ;;  %v305_v63 = vld [vmem:[#allocation5 + $0x1c0] sm:$0xff] }
  0x4d   :  { %405 = vmatpush1.msra.mxu1 %v284_v56  ;;  %1039 = vmatpush3.msra.mxu0 %v252_v2  ;;  %v455_v56 = vld [vmem:[#allocation7 + $0x20] sm:$0xff] }
  0x4e   :  { %406 = vmatprep.subr.mxu1 %v1250_v0  ;;  %1040 = vmatprep.subr.mxu0 %v267_v3 }
  0x4f   :  { %407 = vmatpush1.msra.mxu1 %v283_v57  ;;  %1041 = vmatpush3.msra.mxu0 %v251_v5  ;;  %v454_v57 = vld [vmem:[#allocation7 + $0x18] sm:$0xff] }
  0x50   :  { %408 = vmatprep.subr.mxu1 %v1250_v0  ;;  %1042 = vmatprep.subr.mxu0 %v266_v6  ;;  %v1324_v6 = vld [vmem:[#allocation7 + $0x380] sm:$0xff] }
  0x51   :  { %409 = vmatpush1.msra.mxu1 %v282_v58  ;;  %1043 = vmatpush3.msra.mxu0 %v250_v8  ;;  %v453_v58 = vld [vmem:[#allocation7 + $0x10] sm:$0xff] }
  0x52   :  { %410 = vmatprep.subr.mxu1 %v1250_v0  ;;  %1044 = vmatprep.subr.mxu0 %v265_v9  ;;  %v661_v9 = vld [vmem:[#allocation7 + $0x1f0] sm:$0xff] }
  0x53   :  { %411 = vmatpush1.msra.mxu1 %v281_v59  ;;  %1045 = vmatpush3.msra.mxu0 %v249_v11  ;;  %v452_v59 = vld [vmem:[#allocation7 + $0x8] sm:$0xff]  ;;  %v659_v11 = vld [vmem:[#allocation7 + $0x1e0] sm:$0xff] }
  0x54   :  { %428 = vmatprep.subr.mxu1 %v1250_v0  ;;  %484 = vmatprep.subr.mxu0 %v482_v13  ;;  %v657_v13 = vld [vmem:[#allocation7 + $0x1d0] sm:$0xff] }
  0x55   :  { %429 = vmatpush2.msra.mxu1 %v304_v60  ;;  %v451_v60 = vld [vmem:[#allocation7] sm:$0xff] }
  0x56   :  { %430 = vmatprep.subr.mxu1 %v1250_v0 }
  0x57   :  { %431 = vmatpush2.msra.mxu1 %v303_v61 }
  0x58   :  { %432 = vmatprep.subr.mxu1 %v1250_v0 }
  0x59   :  { %433 = vmatpush2.msra.mxu1 %v302_v62 }
  0x5a   :  { %434 = vmatprep.subr.mxu1 %v1250_v0 }
  0x5b   :  { %435 = vmatpush2.msra.mxu1 %v301_v1 }
  0x5c   :  { %436 = vmatprep.subr.mxu1 %v1250_v0 }
  0x5d   :  { %437 = vmatpush2.msra.mxu1 %v300_v4 }
  0x5e   :  { %438 = vmatprep.subr.mxu1 %v1250_v0 }
  0x5f   :  { %439 = vmatpush2.msra.mxu1 %v299_v7  ;;  %v662_v7 = vld [vmem:[#allocation7 + $0x1f8] sm:$0xff] }
  0x60   :  { %440 = vmatprep.subr.mxu1 %v1250_v0 }
  0x61   :  { %441 = vmatpush2.msra.mxu1 %v298_v10  ;;  %v660_v10 = vld [vmem:[#allocation7 + $0x1e8] sm:$0xff] }
  0x62   :  { %442 = vmatprep.subr.mxu1 %v1250_v0 }
  0x63   :  { %443 = vmatpush2.msra.mxu1 %v297_v12  ;;  %v658_v12 = vld [vmem:[#allocation7 + $0x1d8] sm:$0xff] }
  0x64   :  { %1079 = vmatprep.subr.mxu1 %v1250_v0 }
  0xf3   :  { %v169_v16 = vpop.f32.mrf.mxu0  ;;  %v240_v17 = vpop.f32.mrf.mxu1 }
  0xf4   :  { %v241_v20 = vadd.f32 %v240_v17, %v84_v14  ;;  %v170_v21 = vadd.f32 %v169_v16, %v82_v15  ;;  %v656_v14 = vld [vmem:[#allocation7 + $0x1c8] sm:$0xff]  ;;  %v655_v15 = vld [vmem:[#allocation7 + $0x1c0] sm:$0xff]  ;;  %v654_v16 = vld [vmem:[#allocation7 + $0x1b8] sm:$0xff] }
  0xf5   :  { %v171_v22 = vpop.f32.mrf.mxu0  ;;  %v242_v23 = vpop.f32.mrf.mxu1  ;;  %v653_v17 = vld [vmem:[#allocation7 + $0x1b0] sm:$0xff] }
  0xf6   :  { %v172_v24 = vadd.f32 %v171_v22, %v83_v18  ;;  %v243_v25 = vadd.f32 %v242_v23, %v85_v19  ;;  %v247_v26 = vmax.f32 %v241_v20, 0.0  ;;  %v245_v29 = vmax.f32 %v170_v21, 0.0  ;;  %v652_v18 = vld [vmem:[#allocation7 + $0x1a8] sm:$0xff]  ;;  %v651_v19 = vld [vmem:[#allocation7 + $0x1a0] sm:$0xff]  ;;  %v650_v20 = vld [vmem:[#allocation7 + $0x198] sm:$0xff] }
  0xf7   :  { %v649_v21 = vld [vmem:[#allocation7 + $0x190] sm:$0xff]  ;;  %v648_v22 = vld [vmem:[#allocation7 + $0x188] sm:$0xff]  ;;  %v647_v23 = vld [vmem:[#allocation7 + $0x180] sm:$0xff] }
  0xf8   :  { %v246_v27 = vmax.f32 %v172_v24, 0.0  ;;  %v248_v28 = vmax.f32 %v243_v25, 0.0  ;;  %v646_v24 = vld [vmem:[#allocation7 + $0x178] sm:$0xff]  ;;  %v645_v25 = vld [vmem:[#allocation7 + $0x170] sm:$0xff] }
  0xfa   :  { %374 = vmatprep.mubr.f32.mxu0 %v246_v27  ;;  %1010 = vmatprep.mubr.msk.f32.mxu1 %vm306_vm2, %v248_v28  ;;  %v643_v27 = vld [vmem:[#allocation7 + $0x160] sm:$0xff]  ;;  %v642_v28 = vld [vmem:[#allocation7 + $0x158] sm:$0xff] }
  0xfb   :  { %375 = vmatmul.mubr.f32.vlgmr.msra.gmra.mxu0 %v245_v29  ;;  %445 = vmatmul.mubr.f32.vlgmr.msra.gmra.mxu1 %v247_v26  ;;  %v644_v26 = vld [vmem:[#allocation7 + $0x168] sm:$0xff]  ;;  %v641_v29 = vld [vmem:[#allocation7 + $0x150] sm:$0xff] }
  0xfc   :  { %485 = vmatpush1.msra.mxu0 %v481_v30  ;;  %548 = vmatprep.mubr.f32.mxu0 %v1250_v0  ;;  %v640_v30 = vld [vmem:[#allocation7 + $0x148] sm:$0xff] }
  0xfd   :  { %486 = vmatprep.subr.mxu0 %v480_v31  ;;  %1081 = vmatprep.mubr.msk.f32.mxu1 %vm1251_vm3, %v1250_v0  ;;  %v639_v31 = vld [vmem:[#allocation7 + $0x140] sm:$0xff] }
  0xfe   :  { %487 = vmatpush1.msra.mxu0 %v479_v32  ;;  %v638_v32 = vld [vmem:[#allocation7 + $0x138] sm:$0xff] }
  0xff   :  { %488 = vmatprep.subr.mxu0 %v478_v33  ;;  %v637_v33 = vld [vmem:[#allocation7 + $0x130] sm:$0xff] }
 0x100   :  { %489 = vmatpush1.msra.mxu0 %v477_v34  ;;  %v636_v34 = vld [vmem:[#allocation7 + $0x128] sm:$0xff] }
 0x101   :  { %490 = vmatprep.subr.mxu0 %v476_v35  ;;  %v635_v35 = vld [vmem:[#allocation7 + $0x120] sm:$0xff] }
 0x102   :  { %491 = vmatpush1.msra.mxu0 %v475_v36  ;;  %v634_v36 = vld [vmem:[#allocation7 + $0x118] sm:$0xff] }
 0x103   :  { %492 = vmatprep.subr.mxu0 %v474_v37  ;;  %v633_v37 = vld [vmem:[#allocation7 + $0x110] sm:$0xff] }
 0x104   :  { %493 = vmatpush1.msra.mxu0 %v473_v38  ;;  %v632_v38 = vld [vmem:[#allocation7 + $0x108] sm:$0xff] }
 0x105   :  { %494 = vmatprep.subr.mxu0 %v472_v39  ;;  %v631_v39 = vld [vmem:[#allocation7 + $0x100] sm:$0xff] }
 0x106   :  { %495 = vmatpush1.msra.mxu0 %v471_v40 }
 0x107   :  { %496 = vmatprep.subr.mxu0 %v470_v41  ;;  %v483_v41 = vld [vmem:[#allocation7 + $0x3a0] ss:$0 sm:$0xff] }
 0x108   :  { %497 = vmatpush1.msra.mxu0 %v469_v42 }
 0x109   :  { %498 = vmatprep.subr.mxu0 %v468_v43 }
 0x10a   :  { %499 = vmatpush1.msra.mxu0 %v467_v44 }
 0x10b   :  { %500 = vmatprep.subr.mxu0 %v466_v45 }
 0x10c   :  { %501 = vmatpush1.msra.mxu0 %v465_v46 }
 0x10d   :  { %502 = vmatprep.subr.mxu0 %v464_v47 }
 0x10e   :  { %503 = vmatpush1.msra.mxu0 %v463_v48  ;;  %v830_v48 = vld [vmem:[#allocation7 + $0x2f0] sm:$0xff] }
 0x10f   :  { %504 = vmatprep.subr.mxu0 %v462_v49  ;;  %v829_v49 = vld [vmem:[#allocation7 + $0x2e0] sm:$0xff] }
 0x110   :  { %505 = vmatpush1.msra.mxu0 %v461_v50  ;;  %v828_v50 = vld [vmem:[#allocation7 + $0x2d0] sm:$0xff] }
 0x111   :  { %506 = vmatprep.subr.mxu0 %v460_v51  ;;  %v827_v51 = vld [vmem:[#allocation7 + $0x2c0] sm:$0xff] }
 0x112   :  { %507 = vmatpush1.msra.mxu0 %v459_v52  ;;  %v826_v52 = vld [vmem:[#allocation7 + $0x2b0] sm:$0xff] }
 0x113   :  { %508 = vmatprep.subr.mxu0 %v458_v53  ;;  %v825_v53 = vld [vmem:[#allocation7 + $0x2a0] sm:$0xff] }
 0x114   :  { %509 = vmatpush1.msra.mxu0 %v457_v54  ;;  %v824_v54 = vld [vmem:[#allocation7 + $0x290] sm:$0xff] }
 0x115   :  { %510 = vmatprep.subr.mxu0 %v456_v55  ;;  %v823_v55 = vld [vmem:[#allocation7 + $0x280] sm:$0xff] }
 0x116   :  { %511 = vmatpush1.msra.mxu0 %v455_v56  ;;  %v822_v56 = vld [vmem:[#allocation7 + $0x270] sm:$0xff] }
 0x117   :  { %512 = vmatprep.subr.mxu0 %v454_v57  ;;  %v821_v57 = vld [vmem:[#allocation7 + $0x260] sm:$0xff] }
 0x118   :  { %513 = vmatpush1.msra.mxu0 %v453_v58  ;;  %v820_v58 = vld [vmem:[#allocation7 + $0x250] sm:$0xff] }
 0x119   :  { %514 = vmatprep.subr.mxu0 %v452_v59  ;;  %v819_v59 = vld [vmem:[#allocation7 + $0x240] sm:$0xff] }
 0x11a   :  { %515 = vmatpush1.msra.mxu0 %v451_v60  ;;  %v818_v60 = vld [vmem:[#allocation7 + $0x230] sm:$0xff] }
 0x11b   :  { %1084 = vmatprep.subr.mxu0 %v1250_v0 }
 0x1bb   :  { %v1046_v61 = vpop.f32.mrf.mxu0  ;;  %v446_v62 = vpop.f32.mrf.mxu1 }
 0x1bd   :  { %v1047_v1 = vpop.f32.mrf.mxu0  ;;  %v448_v2 = vpop.f32.mrf.mxu1 }
 0x1be   :  { %v1048_v3 = vadd.f32 %v1047_v1, %v1046_v61  ;;  %v817_v61 = vld [vmem:[#allocation7 + $0x220] sm:$0xff]  ;;  %v910_v1 = vld [vmem:[#allocation7 + $0x370] sm:$0xff] }
 0x1bf   :  { %v909_v2 = vld [vmem:[#allocation7 + $0x360] sm:$0xff] }
 0x1c0   :  { %v377_v4 = vadd.f32 %v1048_v3, %v305_v63  ;;  %v815_v63 = vld [vmem:[#allocation7 + $0x200] sm:$0xff]  ;;  %v908_v3 = vld [vmem:[#allocation7 + $0x350] sm:$0xff] }
 0x1c2   :  { %v447_v5 = vadd.f32 %v446_v62, %v377_v4  ;;  %v816_v62 = vld [vmem:[#allocation7 + $0x210] sm:$0xff]  ;;  %v907_v4 = vld [vmem:[#allocation7 + $0x340] sm:$0xff] }
 0x1c4   :  { %549 = vmatmul.mubr.f32.vlgmr.msra.gmra.mxu0 %v447_v5  ;;  %v906_v5 = vld [vmem:[#allocation7 + $0x330] sm:$0xff] }
 0x1c5   :  { %1086 = vmatprep.mubr.msk.f32.mxu0 %vm1251_vm3, %v1250_v0 }
 0x284   :  { %v550_v8 = vpop.f32.mrf.mxu0 }
 0x285   :  { %1080 = vmatpush3.msra.mxu1 %v550_v8 }
 0x286   :  { %1082 = vmatmul.mubr.msk.f32.vlgmr.msra.gmra.mxu1 %vm555_vm4, %v1324_v6  ;;  %664 = vmatprep.subr.mxu1 %v662_v7  ;;  %v552_v40 = vpop.f32.mrf.mxu0  ;;  %v663_v7 = vld [vmem:[#allocation7 + $0x3a1] ss:$0 sm:$0xff] }
 0x287   :  { %665 = vmatpush1.msra.mxu1 %v661_v9  ;;  %728 = vmatprep.mubr.f32.mxu1 %v1250_v0 }
 0x288   :  { %666 = vmatprep.subr.mxu1 %v660_v10 }
 0x289   :  { %667 = vmatpush1.msra.mxu1 %v659_v11 }
 0x28a   :  { %668 = vmatprep.subr.mxu1 %v658_v12 }
 0x28b   :  { %669 = vmatpush1.msra.mxu1 %v657_v13 }
 0x28c   :  { %670 = vmatprep.subr.mxu1 %v656_v14 }
 0x28d   :  { %671 = vmatpush1.msra.mxu1 %v655_v15 }
 0x28e   :  { %672 = vmatprep.subr.mxu1 %v654_v16 }
 0x28f   :  { %673 = vmatpush1.msra.mxu1 %v653_v17 }
 0x290   :  { %674 = vmatprep.subr.mxu1 %v652_v18 }
 0x291   :  { %675 = vmatpush1.msra.mxu1 %v651_v19 }
 0x292   :  { %676 = vmatprep.subr.mxu1 %v650_v20  ;;  %v905_v20 = vld [vmem:[#allocation7 + $0x320] sm:$0xff] }
 0x293   :  { %677 = vmatpush1.msra.mxu1 %v649_v21  ;;  %v904_v21 = vld [vmem:[#allocation7 + $0x310] sm:$0xff] }
 0x294   :  { %678 = vmatprep.subr.mxu1 %v648_v22  ;;  %v903_v22 = vld [vmem:[#allocation7 + $0x300] sm:$0xff] }
 0x295   :  { %679 = vmatpush1.msra.mxu1 %v647_v23  ;;  %v831_v23 = vld [vmem:[#allocation7 + $0x3a2] ss:$0 sm:$0xff] }
 0x296   :  { %680 = vmatprep.subr.mxu1 %v646_v24 }
 0x297   :  { %681 = vmatpush1.msra.mxu1 %v645_v25 }
 0x298   :  { %682 = vmatprep.subr.mxu1 %v644_v26 }
 0x299   :  { %683 = vmatpush1.msra.mxu1 %v643_v27 }
 0x29a   :  { %684 = vmatprep.subr.mxu1 %v642_v28  ;;  %v911_v28 = vld [vmem:[#allocation7 + $0x3a3] ss:$0 sm:$0xff] }
 0x29b   :  { %685 = vmatpush1.msra.mxu1 %v641_v29 }
 0x29c   :  { %686 = vmatprep.subr.mxu1 %v640_v30 }
 0x29d   :  { %687 = vmatpush1.msra.mxu1 %v639_v31 }
 0x29e   :  { %688 = vmatprep.subr.mxu1 %v638_v32 }
 0x29f   :  { %689 = vmatpush1.msra.mxu1 %v637_v33 }
 0x2a0   :  { %690 = vmatprep.subr.mxu1 %v636_v34 }
 0x2a1   :  { %691 = vmatpush1.msra.mxu1 %v635_v35 }
 0x2a2   :  { %692 = vmatprep.subr.mxu1 %v634_v36 }
 0x2a3   :  { %693 = vmatpush1.msra.mxu1 %v633_v37 }
 0x2a4   :  { %694 = vmatprep.subr.mxu1 %v632_v38 }
 0x2a5   :  { %695 = vmatpush1.msra.mxu1 %v631_v39 }
 0x2a6   :  { %1124 = vmatprep.subr.mxu1 %v1250_v0 }
 0x346   :  { %v625_v42 = vpop.f32.mrf.mxu1 }
 0x347   :  { %v626_v43 = vadd.f32 %v625_v42, %v552_v40 }
 0x348   :  { %v1083_v44 = vpop.f32.mrf.mxu1 }
 0x349   :  { %v629_v45 = vadd.f32 %v626_v43, %v483_v41 }
 0x34b   :  { %v630_v46 = vmax.f32 %v629_v45, 0.0 }
 0x34d   :  { %729 = vmatmul.mubr.f32.vlgmr.msra.gmra.mxu1 %v630_v46 }
 0x34e   :  { %1140 = vmatprep.mubr.msk.f32.mxu1 %vm1251_vm3, %v1250_v0  ;;  %1125 = vmatpush3.msra.mxu1 %v910_v1 }
 0x34f   :  { %1126 = vmatprep.subr.mxu1 %v1250_v0 }
 0x350   :  { %1127 = vmatpush3.msra.mxu1 %v909_v2 }
 0x351   :  { %1128 = vmatprep.subr.mxu1 %v1250_v0 }
 0x352   :  { %1129 = vmatpush3.msra.mxu1 %v908_v3 }
 0x353   :  { %1130 = vmatprep.subr.mxu1 %v1250_v0 }
 0x354   :  { %1131 = vmatpush3.msra.mxu1 %v907_v4 }
 0x355   :  { %1132 = vmatprep.subr.mxu1 %v1250_v0 }
 0x356   :  { %1133 = vmatpush3.msra.mxu1 %v906_v5 }
 0x357   :  { %1134 = vmatprep.subr.mxu1 %v1250_v0 }
 0x358   :  { %1135 = vmatpush3.msra.mxu1 %v905_v20 }
 0x359   :  { %1136 = vmatprep.subr.mxu1 %v1250_v0 }
 0x35a   :  { %1137 = vmatpush3.msra.mxu1 %v904_v21 }
 0x35b   :  { %1138 = vmatprep.subr.mxu1 %v1250_v0 }
 0x35c   :  { %1139 = vmatpush3.msra.mxu1 %v903_v22 }
 0x40d   :  { %v730_v47 = vpop.f32.mrf.mxu1 }
 0x40e   :  { %1085 = vmatpush3.msra.mxu0 %v730_v47 }
 0x40f   :  { %1087 = vmatmul.mubr.msk.f32.vlgmr.msra.gmra.mxu0 %vm555_vm4, %v1324_v6  ;;  %1089 = vmatprep.subr.mxu0 %v1250_v0  ;;  %v732_v6 = vpop.f32.mrf.mxu1 }
 0x410   :  { %1090 = vmatpush3.msra.mxu0 %v830_v48  ;;  %1121 = vmatprep.mubr.msk.f32.mxu0 %vm1251_vm3, %v1250_v0 }
 0x411   :  { %1091 = vmatprep.subr.mxu0 %v1250_v0 }
 0x412   :  { %1092 = vmatpush3.msra.mxu0 %v829_v49 }
 0x413   :  { %1093 = vmatprep.subr.mxu0 %v1250_v0 }
 0x414   :  { %1094 = vmatpush3.msra.mxu0 %v828_v50 }
 0x415   :  { %1095 = vmatprep.subr.mxu0 %v1250_v0 }
 0x416   :  { %1096 = vmatpush3.msra.mxu0 %v827_v51 }
 0x417   :  { %1097 = vmatprep.subr.mxu0 %v1250_v0 }
 0x418   :  { %1098 = vmatpush3.msra.mxu0 %v826_v52 }
 0x419   :  { %1099 = vmatprep.subr.mxu0 %v1250_v0 }
 0x41a   :  { %1100 = vmatpush3.msra.mxu0 %v825_v53 }
 0x41b   :  { %1101 = vmatprep.subr.mxu0 %v1250_v0 }
 0x41c   :  { %1102 = vmatpush3.msra.mxu0 %v824_v54 }
 0x41d   :  { %1103 = vmatprep.subr.mxu0 %v1250_v0 }
 0x41e   :  { %1104 = vmatpush3.msra.mxu0 %v823_v55 }
 0x41f   :  { %1105 = vmatprep.subr.mxu0 %v1250_v0 }
 0x420   :  { %1106 = vmatpush3.msra.mxu0 %v822_v56 }
 0x421   :  { %1107 = vmatprep.subr.mxu0 %v1250_v0 }
 0x422   :  { %1108 = vmatpush3.msra.mxu0 %v821_v57 }
 0x423   :  { %1109 = vmatprep.subr.mxu0 %v1250_v0 }
 0x424   :  { %1110 = vmatpush3.msra.mxu0 %v820_v58 }
 0x425   :  { %1111 = vmatprep.subr.mxu0 %v1250_v0 }
 0x426   :  { %1112 = vmatpush3.msra.mxu0 %v819_v59 }
 0x427   :  { %1113 = vmatprep.subr.mxu0 %v1250_v0 }
 0x428   :  { %1114 = vmatpush3.msra.mxu0 %v818_v60 }
 0x429   :  { %1115 = vmatprep.subr.mxu0 %v1250_v0 }
 0x42a   :  { %1116 = vmatpush3.msra.mxu0 %v817_v61 }
 0x42b   :  { %1117 = vmatprep.subr.mxu0 %v1250_v0 }
 0x42c   :  { %1118 = vmatpush3.msra.mxu0 %v816_v62 }
 0x42d   :  { %1119 = vmatprep.subr.mxu0 %v1250_v0 }
 0x42e   :  { %1120 = vmatpush3.msra.mxu0 %v815_v63 }
 0x4cf   :  { %v801_v8 = vpop.f32.mrf.mxu0 }
 0x4d0   :  { %v802_v9 = vadd.f32 %v801_v8, %v732_v6 }
 0x4d1   :  { %v1088_v10 = vpop.f32.mrf.mxu0 }
 0x4d2   :  { %v805_v11 = vadd.f32 %v802_v9, %v663_v7 }
 0x4d4   :  { %v806_v12 = vmax.f32 %v805_v11, 0.0 }
 0x4d6   :  { %v808_v13 = vsel %vm807_vm5, %v806_v12, -inf }
 0x4d7   :  { %v809_v14 = vrot.slane %v808_v13, 4 }
 0x4d9   :  { %v810_v15 = vmax.f32 %v808_v13, %v809_v14 }
 0x4db   :  { %v811_v16 = vrot.slane %v810_v15, 2 }
 0x4dd   :  { %v812_v17 = vmax.f32 %v810_v15, %v811_v16 }
 0x4df   :  { %v813_v18 = vrot.slane %v812_v17, 1 }
 0x4e1   :  { %v814_v19 = vmax.f32 %v812_v17, %v813_v18 }
 0x4e3   :  { %1122 = vmatmul.mubr.f32.vlgmr.msra.gmra.mxu0 %v814_v19 }
 0x5a3   :  { %v898_v24 = vpop.f32.mrf.mxu0 }
 0x5a4   :  { %v899_v25 = vadd.f32 %v898_v24, %v831_v23 }
 0x5a5   :  { %v1123_v26 = vpop.f32.mrf.mxu0 }
 0x5a6   :  { %v902_v27 = vmax.f32 %v899_v25, 0.0 }
 0x5a8   :  { %1141 = vmatmul.mubr.msk.f32.vlgmr.msra.gmra.mxu1 %vm306_vm2, %v902_v27 }
 0x668   :  { %v981_v29 = vpop.f32.mrf.mxu1 }
 0x669   :  { %v982_v30 = vadd.f32 %v981_v29, %v911_v28 }
 0x66a   :  { %v1142_v31 = vpop.f32.mrf.mxu1 }
 0x66b   :  { %986 = vst.msk [vmem:[#allocation8] sm:$0x1] %vm985_vm6, %v982_v30 }
 0x66c   :  { %1226 = shalt.err (!%p1223_p5)
}
 0x66d   :  { %996 = dma.vmem_to_hbm [thread:$0]  %s994_s9, 16, %s1367_s4, [#allocation4]  }
 0x66e   :  { %1239 = dma.done.wait [#allocation4], 16  }
 0x66f   :  { %1240 = vsyncadd [#allocation4], 4294967280 }
 0x670   :  { %1000 = vsyncpa [#allocation3], 1 }
 0x671   :  { %1001 = vsyncpa [#allocation6], 1 }
 0x672   :  { %1002 = vsyncpa [#allocation4], 1 }

</bundles_post_ra>
